<compile_context>
chip_gen: v6e
topology: v6e:2x2x1
jax: 0.10.0
libtpu: 0.0.40
codegen_flags: <defaults>
</compile_context>

<pallas_src>
import jax
import jax.numpy as jnp
from jax.experimental import pallas as pl
from jax.experimental.pallas import tpu as pltpu

LANE = 128
SUBLANE = 8


def _round_up(n, m):
    return ((n + m - 1) // m) * m


def _pad_axis(a, target, axis):
    pad = target - a.shape[axis]
    if pad <= 0:
        return a
    widths = [(0, 0)] * a.ndim
    widths[axis] = (0, pad)
    return jnp.pad(a, widths)


def _teacher_kernel(x_ref, w1_ref, b1_ref, w2_ref, b2_ref, o_ref):
    # fc1 + ReLU (MXU matmul, f32 accumulation).  Padded hidden columns of w1/b1
    # are zero, so ReLU leaves them exactly 0 and the padded rows of w2 (also 0)
    # contribute nothing to the logits.
    x = x_ref[...]
    h = jnp.dot(x, w1_ref[...], preferred_element_type=jnp.float32) + b1_ref[...]
    h = jnp.maximum(h, 0.0)

    # fc2 -> logits over the real 10 classes (no class padding, no masking).
    logits = jnp.dot(h, w2_ref[...], preferred_element_type=jnp.float32) + b2_ref[...]

    # Numerically stable softmax over dim=1 (last axis), exact division.
    m = jnp.max(logits, axis=-1, keepdims=True)
    e = jnp.exp(logits - m)
    denom = jnp.sum(e, axis=-1, keepdims=True)
    o_ref[...] = (e / denom).astype(o_ref.dtype)


def prepare_params(w1, b1, w2, b2):
    """One-time weight prep: pad the hidden dim (100 -> 128) only.

    Weights are tiny and per-call constant, so this runs once, not per forward.
    """
    hidden = w1.shape[1]
    h_p = _round_up(hidden, LANE)
    w1p = _pad_axis(w1, h_p, 1)                       # [30, 128]
    b1p = _pad_axis(b1.reshape(1, -1), h_p, 1)        # [1, 128]
    w2p = _pad_axis(w2, h_p, 0)                       # [128, 10]
    b2p = b2.reshape(1, -1)                           # [1, 10]
    return w1p, b1p, w2p, b2p


def teacher_forward(x, w1p, b1p, w2p, b2p, *, batch_tile=4096):
    """Fused forward pass. x: [B, 30] f32; weights already prepared (padded)."""
    B, Din = x.shape
    Hp = w1p.shape[1]
    Dout = w2p.shape[1]

    # Batch tile: big enough to amortize per-grid-step overhead, capped so VMEM
    # stays small everywhere (4096-row tile ~= 3.5 MiB including intermediates),
    # and sized to give >= 2 grid steps for non-trivial batches (v7x megacore).
    bt = min(batch_tile, max(SUBLANE, _round_up(pl.cdiv(B, 2), SUBLANE)))
    grid = (pl.cdiv(B, bt),)

    cost = pl.CostEstimate(
        flops=2 * B * (Din * Hp + Hp * Dout),
        transcendentals=B * Dout,
        bytes_accessed=4 * (B * Din + Din * Hp + Hp
                            + Hp * Dout + Dout + B * Dout),
    )

    out = pl.pallas_call(
        _teacher_kernel,
        out_shape=jax.ShapeDtypeStruct((B, Dout), jnp.float32),
        grid=grid,
        in_specs=[
            # x tile: last dim == full array dim (30), second-to-last multiple of 8.
            pl.BlockSpec((bt, Din), lambda i: (i, 0)),
            # Weights/biases: constant index_map -> VMEM-resident across steps.
            pl.BlockSpec((Din, Hp), lambda i: (0, 0)),
            pl.BlockSpec((1, Hp), lambda i: (0, 0)),
            pl.BlockSpec((Hp, Dout), lambda i: (0, 0)),
            pl.BlockSpec((1, Dout), lambda i: (0, 0)),
        ],
        # Output at its true width (10): ragged last batch block writes are masked.
        out_specs=pl.BlockSpec((bt, Dout), lambda i: (i, 0)),
        compiler_params=pltpu.CompilerParams(
            dimension_semantics=("parallel",),
            vmem_limit_bytes=32 * 1024 * 1024,
        ),
        cost_estimate=cost,
    )(x, w1p, b1p, w2p, b2p)
    return out


def make_params(key):
    """nn.Linear-style uniform(-1/sqrt(fan_in), 1/sqrt(fan_in)) init."""
    k1, k2, k3, k4 = jax.random.split(key, 4)
    din, hidden, dout = 30, 100, 10
    bound1 = 1.0 / jnp.sqrt(din)
    bound2 = 1.0 / jnp.sqrt(hidden)
    # stored as [in, out] (pre-transposed relative to PyTorch's [out, in])
    w1 = jax.random.uniform(k1, (din, hidden), jnp.float32, -bound1, bound1)
    b1 = jax.random.uniform(k2, (hidden,), jnp.float32, -bound1, bound1)
    w2 = jax.random.uniform(k3, (hidden, dout), jnp.float32, -bound2, bound2)
    b2 = jax.random.uniform(k4, (dout,), jnp.float32, -bound2, bound2)
    return w1, b1, w2, b2


def reference_forward(x, w1, b1, w2, b2):
    h = jnp.maximum(x @ w1 + b1, 0.0)
    logits = h @ w2 + b2
    return jax.nn.softmax(logits, axis=1)


if __name__ == "__main__":
    key = jax.random.PRNGKey(0)
    kx, kp, kx2 = jax.random.split(key, 3)

    w1, b1, w2, b2 = make_params(kp)
    params = prepare_params(w1, b1, w2, b2)   # hoisted one-time padding

    # Small batch: single grid step, whole problem resident in VMEM.
    B = 8
    x = jax.random.normal(kx, (B, 30), jnp.float32)
    out = jax.block_until_ready(teacher_forward(x, *params))
    ref = reference_forward(x, w1, b1, w2, b2)
    assert out.shape == (B, 10)
    assert jnp.allclose(out, ref, atol=1e-5, rtol=1e-5), \
        float(jnp.max(jnp.abs(out - ref)))
    assert jnp.allclose(jnp.sum(out, axis=1), jnp.ones((B,)), atol=1e-5)

    # Non-tile-multiple batch: exercises the multi-step grid with a ragged
    # last block (out-of-bounds rows are computed but their writes are masked).
    B2 = 100
    x2 = jax.random.normal(kx2, (B2, 30), jnp.float32)
    out2 = jax.block_until_ready(teacher_forward(x2, *params))
    ref2 = reference_forward(x2, w1, b1, w2, b2)
    assert out2.shape == (B2, 10)
    assert jnp.allclose(out2, ref2, atol=1e-5, rtol=1e-5), \
        float(jnp.max(jnp.abs(out2 - ref2)))
    assert jnp.allclose(jnp.sum(out2, axis=1), jnp.ones((B2,)), atol=1e-5)

    print("KERNEL_OK")
</pallas_src>

<mosaic_0001>
module attributes {stable_mosaic.version = 11 : i64} {
  func.func @_teacher_kernel(%arg0: i32, %arg1: memref<8x30xf32, #tpu.memory_space<vmem>>, %arg2: memref<30x128xf32, #tpu.memory_space<vmem>>, %arg3: memref<1x128xf32, #tpu.memory_space<vmem>>, %arg4: memref<128x10xf32, #tpu.memory_space<vmem>>, %arg5: memref<1x10xf32, #tpu.memory_space<vmem>>, %arg6: memref<8x10xf32, #tpu.memory_space<vmem>>) attributes {dimension_semantics = [#tpu.dimension_semantics<parallel>], iteration_bounds = array<i64: 1>, scalar_prefetch = 0 : i64, scratch_operands = 0 : i64, tpu.core_type = #tpu.core_type<tc>, window_params = [{transform_indices = @transform_0, window_bounds = array<i64: 8, 30>}, {pipeline_mode = #tpu.pipeline_mode<synchronous>, transform_indices = @transform_1, window_bounds = array<i64: 30, 128>}, {pipeline_mode = #tpu.pipeline_mode<synchronous>, transform_indices = @transform_2, window_bounds = array<i64: 1, 128>}, {pipeline_mode = #tpu.pipeline_mode<synchronous>, transform_indices = @transform_3, window_bounds = array<i64: 128, 10>}, {pipeline_mode = #tpu.pipeline_mode<synchronous>, transform_indices = @transform_4, window_bounds = array<i64: 1, 10>}, {transform_indices = @transform_5, window_bounds = array<i64: 8, 10>}]} {
    %c0 = arith.constant 0 : index
    %c0_0 = arith.constant 0 : index
    %0 = vector.load %arg1[%c0, %c0_0] : memref<8x30xf32, #tpu.memory_space<vmem>>, vector<8x30xf32>
    %c0_1 = arith.constant 0 : index
    %c0_2 = arith.constant 0 : index
    %1 = vector.load %arg2[%c0_1, %c0_2] : memref<30x128xf32, #tpu.memory_space<vmem>>, vector<30x128xf32>
    %cst = arith.constant dense<0.000000e+00> : vector<8x128xf32>
    %2 = tpu.matmul %0, %1, %cst {dimension_numbers = #tpu.dot_dimension_numbers<[1], [0], [0], [1], [0, 0, 1, 1], [], []>} : vector<8x30xf32>, vector<30x128xf32>, vector<8x128xf32> -> vector<8x128xf32>
    %c0_3 = arith.constant 0 : index
    %c0_4 = arith.constant 0 : index
    %3 = vector.load %arg3[%c0_3, %c0_4] : memref<1x128xf32, #tpu.memory_space<vmem>>, vector<1x128xf32>
    %4 = vector.broadcast %3 : vector<1x128xf32> to vector<8x128xf32>
    %5 = arith.addf %2, %4 : vector<8x128xf32>
    %cst_5 = arith.constant 0.000000e+00 : f32
    %6 = vector.broadcast %cst_5 : f32 to vector<8x128xf32>
    %7 = arith.maximumf %5, %6 : vector<8x128xf32>
    %c0_6 = arith.constant 0 : index
    %c0_7 = arith.constant 0 : index
    %8 = vector.load %arg4[%c0_6, %c0_7] : memref<128x10xf32, #tpu.memory_space<vmem>>, vector<128x10xf32>
    %cst_8 = arith.constant dense<0.000000e+00> : vector<8x10xf32>
    %9 = tpu.matmul %7, %8, %cst_8 {dimension_numbers = #tpu.dot_dimension_numbers<[1], [0], [0], [1], [0, 0, 1, 1], [], []>} : vector<8x128xf32>, vector<128x10xf32>, vector<8x10xf32> -> vector<8x10xf32>
    %c0_9 = arith.constant 0 : index
    %c0_10 = arith.constant 0 : index
    %10 = vector.load %arg5[%c0_9, %c0_10] : memref<1x10xf32, #tpu.memory_space<vmem>>, vector<1x10xf32>
    %11 = vector.broadcast %10 : vector<1x10xf32> to vector<8x10xf32>
    %12 = arith.addf %9, %11 : vector<8x10xf32>
    %cst_11 = arith.constant dense<0xFF800000> : vector<8xf32>
    %13 = vector.multi_reduction <maximumf>, %12, %cst_11 [1] : vector<8x10xf32> to vector<8xf32>
    %14 = vector.shape_cast %13 : vector<8xf32> to vector<8x1xf32>
    %15 = vector.broadcast %14 : vector<8x1xf32> to vector<8x10xf32>
    %16 = arith.subf %12, %15 : vector<8x10xf32>
    %17 = math.exp %16 : vector<8x10xf32>
    %cst_12 = arith.constant dense<0.000000e+00> : vector<8xf32>
    %18 = vector.multi_reduction <add>, %17, %cst_12 [1] : vector<8x10xf32> to vector<8xf32>
    %19 = vector.shape_cast %18 : vector<8xf32> to vector<8x1xf32>
    %20 = vector.broadcast %19 : vector<8x1xf32> to vector<8x10xf32>
    %21 = arith.divf %17, %20 : vector<8x10xf32>
    %c0_13 = arith.constant 0 : index
    %c0_14 = arith.constant 0 : index
    %22 = vector.load %arg6[%c0_13, %c0_14] : memref<8x10xf32, #tpu.memory_space<vmem>>, vector<8x10xf32>
    tpu.vector_store %arg6[%c0_13, %c0_14], %21 {strides = array<i32>} : memref<8x10xf32, #tpu.memory_space<vmem>>, vector<8x10xf32>,
    return
  }
  func.func @transform_0(%arg0: i32) -> (i32, i32) {
    %c0_i32 = arith.constant 0 : i32
    %c0_i32_0 = arith.constant 0 : i32
    return %arg0, %c0_i32 : i32, i32
  }
  func.func @transform_1(%arg0: i32) -> (i32, i32) {
    %c0_i32 = arith.constant 0 : i32
    %c0_i32_0 = arith.constant 0 : i32
    %c0_i32_1 = arith.constant 0 : i32
    return %c0_i32, %c0_i32_0 : i32, i32
  }
  func.func @transform_2(%arg0: i32) -> (i32, i32) {
    %c0_i32 = arith.constant 0 : i32
    %c0_i32_0 = arith.constant 0 : i32
    %c0_i32_1 = arith.constant 0 : i32
    return %c0_i32, %c0_i32_0 : i32, i32
  }
  func.func @transform_3(%arg0: i32) -> (i32, i32) {
    %c0_i32 = arith.constant 0 : i32
    %c0_i32_0 = arith.constant 0 : i32
    %c0_i32_1 = arith.constant 0 : i32
    return %c0_i32, %c0_i32_0 : i32, i32
  }
  func.func @transform_4(%arg0: i32) -> (i32, i32) {
    %c0_i32 = arith.constant 0 : i32
    %c0_i32_0 = arith.constant 0 : i32
    %c0_i32_1 = arith.constant 0 : i32
    return %c0_i32, %c0_i32_0 : i32, i32
  }
  func.func @transform_5(%arg0: i32) -> (i32, i32) {
    %c0_i32 = arith.constant 0 : i32
    %c0_i32_0 = arith.constant 0 : i32
    return %arg0, %c0_i32 : i32, i32
  }
}

</mosaic_0001>

<bundles_post_ra>
// kernel: tpu_custom_call.1
= control target key start
LH: loop header
LB: loop body
LE: loop exit
PB: predicated region body
PF: predicated region fallthrough
CT: control target
= control target key end

     0   :  { %vm37_vm0 = vcmask 1045504   ;;  %v333_v1 = vmov 0.0   ;;  %vm334_vm1 = vmmov 0   ;;  %vm33_vm2 = vcmask 244736   ;;  %s465_s0 = inlined_call_operand.vmem [shape: f32[8,30], index: 0, kind: input, shape index: {}]   ;;  %s466_s1 = inlined_call_operand.vmem [shape: f32[30,128], index: 1, kind: input, shape index: {}]   ;;  %s467_s2 = inlined_call_operand.vmem [shape: f32[1,128], index: 2, kind: input, shape index: {}]   ;;  %s468_s3 = inlined_call_operand.vmem [shape: f32[128,10], index: 3, kind: input, shape index: {}]   ;;  %s469_s4 = inlined_call_operand.vmem [shape: f32[1,10], index: 4, kind: input, shape index: {}]   ;;  %s470_s5 = inlined_call_operand.hbm [shape: f32[8,10], index: 5, kind: output, shape index: {}]  }
   0x1   :  { %v25_v0 = vld [vmem:[%s466_s1 + $0x18] sm:$0x3f]  ;;  %258 = vmatprep.subr.mxu0 %v333_v1  ;;  %v24_v2 = vld [vmem:[%s466_s1 + $0x10] sm:$0xff]  ;;  %269 = vmatprep.subr.mxu1 %v333_v1  ;;  %v23_v5 = vld [vmem:[%s466_s1 + $0x8] sm:$0xff] }
   0x2   :  { %v127_v3 = vld [vmem:[%s468_s3 + $0x78] sm:$0xff]  ;;  %259 = vmatpush3.msk.msra.mxu0 %vm37_vm0, %v25_v0  ;;  %266 = vmatprep.mubr.msk.f32.mxu0 %vm334_vm1, %v333_v1  ;;  %v126_v4 = vld [vmem:[%s468_s3 + $0x70] sm:$0xff]  ;;  %v125_v6 = vld [vmem:[%s468_s3 + $0x68] sm:$0xff] }
   0x3   :  { %260 = vmatprep.subr.mxu0 %v333_v1  ;;  %270 = vmatpush3.msra.mxu1 %v127_v3  ;;  %v22_v7 = vld [vmem:[%s466_s1] sm:$0xff] }
   0x4   :  { %261 = vmatpush3.msra.mxu0 %v24_v2  ;;  %271 = vmatprep.subr.mxu1 %v333_v1  ;;  %v21_v8 = vld [vmem:[%s465_s0] sm:$0xff] }
   0x5   :  { %262 = vmatprep.subr.mxu0 %v333_v1  ;;  %272 = vmatpush3.msra.mxu1 %v126_v4  ;;  %v124_v9 = vld [vmem:[%s468_s3 + $0x60] sm:$0xff] }
   0x6   :  { %263 = vmatpush3.msra.mxu0 %v23_v5  ;;  %273 = vmatprep.subr.mxu1 %v333_v1 }
   0x7   :  { %10 = vsyncpa [#allocation3], 0  ;;  %264 = vmatprep.subr.mxu0 %v333_v1  ;;  %274 = vmatpush3.msra.mxu1 %v125_v6  ;;  %v123_v10 = vld [vmem:[%s468_s3 + $0x58] sm:$0xff]  ;;  %v122_v11 = vld [vmem:[%s468_s3 + $0x50] sm:$0xff]  ;;  %vm205_vm3 = vcmask 80896  }
   0x8   :  { %265 = vmatpush3.msra.mxu0 %v22_v7  ;;  %275 = vmatprep.subr.mxu1 %v333_v1  ;;  %v121_v12 = vld [vmem:[%s468_s3 + $0x48] sm:$0xff]  ;;  %v120_v13 = vld [vmem:[%s468_s3 + $0x40] sm:$0xff]  ;;  %v119_v14 = vld [vmem:[%s468_s3 + $0x38] sm:$0xff] }
   0x9   :  { %267 = vmatmul.mubr.msk.f32.vlgmr.msra.gmra.mxu0 %vm33_vm2, %v21_v8  ;;  %276 = vmatpush3.msra.mxu1 %v124_v9  ;;  %v118_v15 = vld [vmem:[%s468_s3 + $0x30] sm:$0xff]  ;;  %v117_v16 = vld [vmem:[%s468_s3 + $0x28] sm:$0xff]  ;;  %v116_v17 = vld [vmem:[%s468_s3 + $0x20] sm:$0xff] }
   0xa   :  { %277 = vmatprep.subr.mxu1 %v333_v1  ;;  %301 = vmatprep.mubr.msk.f32.mxu1 %vm334_vm1, %v333_v1  ;;  %v115_v18 = vld [vmem:[%s468_s3 + $0x18] sm:$0xff]  ;;  %v114_v19 = vld [vmem:[%s468_s3 + $0x10] sm:$0xff]  ;;  %v113_v20 = vld [vmem:[%s468_s3 + $0x8] sm:$0xff] }
   0xb   :  { %278 = vmatpush3.msra.mxu1 %v123_v10  ;;  %v112_v21 = vld [vmem:[%s468_s3] sm:$0xff] }
   0xc   :  { %279 = vmatprep.subr.mxu1 %v333_v1  ;;  %v232_v22 = vld [vmem:[%s467_s2] ss:$0 sm:$0xff]  ;;  %s335_s2 = smov [#allocation2]  }
   0xd   :  { %280 = vmatpush3.msra.mxu1 %v122_v11  ;;  %v235_v27 = vld [vmem:[%s469_s4] ss:$0 sm:$0xff]  ;;  %s224_s3 = sshll.u32 %s335_s2, 4  ;;  %s225_s3 = int_to_ptr.vmem [resolvable:$true] %s224_s3 }
   0xe   :  { %281 = vmatprep.subr.mxu1 %v333_v1  ;;  %s311_s4 = scalar_lea.vmem %s225_s3, 128  ;;  %p316_p1 = scmp.lt.s32.totalorder %s225_s3, %s225_s3 }
   0xf   :  { %282 = vmatpush3.msra.mxu1 %v121_v12  ;;  %p312_p0 = scmp.ne.s32.totalorder %s225_s3, %s311_s4  ;;  %p317_p2 = scmp.lt.s32.totalorder %s311_s4, %s311_s4 }
  0x10   :  { %283 = vmatprep.subr.mxu1 %v333_v1 }
  0x11   :  { %284 = vmatpush3.msra.mxu1 %v120_v13  ;;  %p318_p3 = por %p317_p2, %p316_p1 }
  0x12   :  { %285 = vmatprep.subr.mxu1 %v333_v1 }
  0x13   :  { %286 = vmatpush3.msra.mxu1 %v119_v14  ;;  %p319_p4 = pnand %p318_p3, %p312_p0 }
  0x14   :  { %287 = vmatprep.subr.mxu1 %v333_v1 }
  0x15   :  { %288 = vmatpush3.msra.mxu1 %v118_v15 }
  0x16   :  { %289 = vmatprep.subr.mxu1 %v333_v1 }
  0x17   :  { %290 = vmatpush3.msra.mxu1 %v117_v16 }
  0x18   :  { %291 = vmatprep.subr.mxu1 %v333_v1 }
  0x19   :  { %292 = vmatpush3.msra.mxu1 %v116_v17 }
  0x1a   :  { %293 = vmatprep.subr.mxu1 %v333_v1 }
  0x1b   :  { %294 = vmatpush3.msra.mxu1 %v115_v18 }
  0x1c   :  { %295 = vmatprep.subr.mxu1 %v333_v1 }
  0x1d   :  { %296 = vmatpush3.msra.mxu1 %v114_v19 }
  0x1e   :  { %297 = vmatprep.subr.mxu1 %v333_v1 }
  0x1f   :  { %298 = vmatpush3.msra.mxu1 %v113_v20 }
  0x20   :  { %299 = vmatprep.subr.mxu1 %v333_v1 }
  0x21   :  { %300 = vmatpush3.msra.mxu1 %v112_v21 }
  0xc9   :  { %v107_v23 = vpop.f32.mrf.mxu0 }
  0xca   :  { %v108_v24 = vadd.f32 %v232_v22, %v107_v23 }
  0xcb   :  { %v268_v25 = vpop.f32.mrf.mxu0 }
  0xcc   :  { %v111_v26 = vmax.f32 %v108_v24, 0.0 }
  0xce   :  { %302 = vmatmul.mubr.f32.vlgmr.msra.gmra.mxu1 %v111_v26 }
 0x18e   :  { %v201_v28 = vpop.f32.mrf.mxu1 }
 0x18f   :  { %v202_v29 = vadd.f32 %v235_v27, %v201_v28 }
 0x190   :  { %v303_v30 = vpop.f32.mrf.mxu1 }
 0x191   :  { %v206_v31 = vsel %vm205_vm3, %v202_v29, -inf }
 0x192   :  { %207 = vmax.xlane.f32.xlu0 %v206_v31 }
 0x21b   :  { %v208_v32 = vpop.xlane.xlu0 %207 }
 0x21c   :  { %v209_v33 = vsub.f32 %v202_v29, %v208_v32 }
 0x21e   :  { %v210_v34 = vmul.f32 1.442695, %v209_v33 }
 0x220   :  { %307 = vpow2.f32 %v210_v34 }
 0x22d   :  { %v308_v35 = vpop.eup %307 }
 0x22e   :  { %v212_v36 = vsel %vm205_vm3, %v308_v35, 0.0 }
 0x22f   :  { %213 = vadd.xlane.f32.xlu0 %v212_v36 }
 0x2b8   :  { %v214_v37 = vpop.xlane.xlu0 %213 }
 0x2b9   :  { %309 = vrcp.f32 %v214_v37 }
 0x2c6   :  { %v310_v38 = vpop.eup %309 }
 0x2c7   :  { %v216_v39 = vmul.f32 %v310_v38, %v308_v35 }
 0x2c9   :  { %217 = vst.msk [vmem:[#allocation2] sm:$0xff] %vm205_vm3, %v216_v39 }
 0x2ca   :  { %322 = shalt.err (!%p319_p4)
}
 0x2cb   :  { %227 = dma.vmem_to_hbm [thread:$0]  %s225_s3, 128, %s470_s5, [#allocation3]  }
 0x2cc   :  { %331 = dma.done.wait [#allocation3], 128  }
 0x2cd   :  { %332 = vsyncadd [#allocation3], 4294967168 }
 0x2ce   :  { %231 = vsyncpa [#allocation3], 1 }

</bundles_post_ra>
